<compile_context>
chip_gen: v7x
topology: tpu7x:2x2x1
jax: 0.10.0
libtpu: 0.0.40
codegen_flags: <defaults>
</compile_context>

<pallas_src>
import jax
import jax.numpy as jnp
from jax.experimental import pallas as pl
from jax.experimental.pallas import tpu as pltpu


def _budgets():
    """(tile_bytes, vmem_limit_bytes) per TPU generation; conservative default fits v7x."""
    try:
        vmem_cap = int(getattr(pltpu.get_tpu_info(), "vmem_capacity_bytes", 0))
    except Exception:
        vmem_cap = 0
    if vmem_cap >= 100 * 1024 * 1024:          # v5e / v6e: 128 MiB physical VMEM
        return 8 * 1024 * 1024, 96 * 1024 * 1024
    # v7x (64 MiB per TC) or unknown: settings that fit every generation
    return 4 * 1024 * 1024, 48 * 1024 * 1024


def _pick_group(C, HW):
    """Fold g channels onto the lane axis so the flattened last dim is lane-dense."""
    if HW % 128 == 0 or HW >= 1024:
        return 1                                    # already (nearly) lane-dense, keep mask tiny
    for g in range(1, C + 1):                       # smallest divisor giving a multiple of 128
        if C % g == 0 and (g * HW) % 128 == 0:
            return g
    for g in range(1, C + 1):                       # else at least make rows reasonably wide
        if C % g == 0 and g * HW >= 512:
            return g
    return C


def _sublane(dtype):
    """Second-minor tiling multiple for this dtype (8 f32, 16 bf16, 32 int8)."""
    return max(1, 4 // jnp.dtype(dtype).itemsize) * 8


def _pick_apply_tiles(N, Cg, L, dtype, target_bytes):
    """Pick (nb, tc) block dims for the (N, Cg, L) apply kernel, targeting ~target_bytes."""
    item = jnp.dtype(dtype).itemsize
    sub = _sublane(dtype)
    row_bytes = L * item
    if Cg * row_bytes <= target_bytes:
        # Full channel dim per block; tile over N, preferring >= 2 grid steps (megacore).
        cap = max(1, target_bytes // (Cg * row_bytes))
        divs = [d for d in range(1, N + 1) if N % d == 0 and d <= cap]
        multi = [d for d in divs if N // d >= 2]
        nb = max(multi) if multi else max(divs)
        return nb, Cg
    # One sample per block; tile channels with a sublane-aligned tile.
    cap = max(1, target_bytes // row_bytes)
    good = [t for t in range(sub, Cg + 1, sub) if Cg % t == 0 and t <= cap]
    if good:
        return 1, max(good)
    good = [t for t in range(sub, Cg + 1, sub) if Cg % t == 0]
    if good:
        return 1, min(good)
    return 1, Cg                                     # awkward Cg: single (possibly large) block


def _pick_mask_nb(N, Hp, Wp):
    """Samples per block for the tiny pooling kernel: big batches, but keep >= 2 grid steps."""
    budget = 4 * 1024 * 1024
    fits = [d for d in range(1, N + 1) if N % d == 0 and d * Hp * Wp * 4 <= budget]
    if not fits:
        return 1
    multi = [d for d in fits if N // d >= 2]
    return max(multi) if multi else max(fits)


def _block_mask_pallas(seed_mask, block_size):
    """seed_mask: (N, H, W) float32 in {0,1}.  Returns the already-trimmed
    1 - maxpool_{k, s=1, p=k//2}(seed_mask) of shape (N, H, W)."""
    N, H, W = seed_mask.shape
    pad = block_size // 2
    Hp, Wp = H + 2 * pad, W + 2 * pad
    # zero padding is equivalent to -inf padding here because seed values are in {0, 1}
    seed_p = jnp.pad(seed_mask.astype(jnp.float32), ((0, 0), (pad, pad), (pad, pad)))
    nb = _pick_mask_nb(N, Hp, Wp)
    _, vmem_limit = _budgets()

    def kernel(s_ref, o_ref):
        s = s_ref[...]
        # separable stride-1 max pool: width pass then height pass; output trimmed to (H, W)
        rm = s[:, :, 0:W]
        for dw in range(1, block_size):
            rm = jnp.maximum(rm, s[:, :, dw:dw + W])
        cm = rm[:, 0:H, :]
        for dh in range(1, block_size):
            cm = jnp.maximum(cm, rm[:, dh:dh + H, :])
        o_ref[...] = 1.0 - cm

    return pl.pallas_call(
        kernel,
        out_shape=jax.ShapeDtypeStruct((N, H, W), jnp.float32),
        grid=(N // nb,),
        in_specs=[pl.BlockSpec((nb, Hp, Wp), lambda i: (i, 0, 0))],
        out_specs=pl.BlockSpec((nb, H, W), lambda i: (i, 0, 0)),
        compiler_params=pltpu.CompilerParams(
            dimension_semantics=("parallel",),
            vmem_limit_bytes=vmem_limit),
    )(seed_p)


def _apply_mask_pallas(x, block_mask, factor):
    """out = x * block_mask[:, None, :, :] * factor, preserving x.dtype, lane-dense stores."""
    N, C, H, W = x.shape
    HW = H * W
    g = _pick_group(C, HW)
    Cg, L = C // g, g * HW
    x3 = x.reshape(N, Cg, L)
    m3 = block_mask.reshape(N, 1, HW).astype(jnp.float32)
    if g > 1:
        m3 = jnp.tile(m3, (1, 1, g))                 # mask repeats per folded channel group
    tile_bytes, vmem_limit = _budgets()
    nb, tc = _pick_apply_tiles(N, Cg, L, x.dtype, tile_bytes)

    def kernel(x_ref, m_ref, f_ref, o_ref):
        # x block (nb, tc, L) * mask row block (nb, 1, L) * SMEM scalar factor, f32 math in vregs
        scaled = m_ref[...] * f_ref[0]
        o_ref[...] = (x_ref[...].astype(jnp.float32) * scaled).astype(o_ref.dtype)

    # TODO(synk): if the caller can donate x, add input_output_aliases={0: 0} to drop the
    # second (N, C, H, W) HBM buffer (footprint only, no bandwidth change).
    out = pl.pallas_call(
        kernel,
        out_shape=jax.ShapeDtypeStruct((N, Cg, L), x.dtype),
        grid=(N // nb, Cg // tc),
        in_specs=[
            pl.BlockSpec((nb, tc, L), lambda n, c: (n, c, 0)),
            pl.BlockSpec((nb, 1, L), lambda n, c: (n, 0, 0)),
            pl.BlockSpec(memory_space=pltpu.MemorySpace.SMEM),
        ],
        out_specs=pl.BlockSpec((nb, tc, L), lambda n, c: (n, c, 0)),
        compiler_params=pltpu.CompilerParams(
            dimension_semantics=("parallel", "parallel"),
            vmem_limit_bytes=vmem_limit),
    )(x3, m3, factor)
    return out.reshape(N, C, H, W)


def dropblock2d(x, key, *, drop_prob=0.1, block_size=5, training=True):
    """Pallas DropBlock2D forward.  x: (N, C, H, W) (NCHW, torch layout), dtype preserved."""
    assert x.ndim == 4, 'Expected input with 4 dimensions (bsize, channels, height, width)'
    if not training or drop_prob == 0.0:
        return x
    N, C, H, W = x.shape
    gamma = drop_prob / (block_size ** 2)            # exactly the reference module's gamma
    # TODO(synk): torch.rand's RNG stream cannot be bit-matched; a JAX PRNG Bernoulli is used.
    seed_mask = (jax.random.uniform(key, (N, H, W)) < gamma).astype(jnp.float32)
    block_mask = _block_mask_pallas(seed_mask, block_size)   # (N, H, W), already trimmed
    # renormalization factor; the denominator is clamped so a fully-blocked mask yields zeros
    # instead of the inf/NaN the torch reference would produce in that measure-zero case.
    denom = jnp.maximum(jnp.sum(block_mask), 1.0)
    factor = (jnp.asarray(block_mask.size, jnp.float32) / denom).reshape(1)
    return _apply_mask_pallas(x, block_mask, factor)


if __name__ == "__main__":
    root = jax.random.PRNGKey(0)
    kx, km = jax.random.split(root)
    N, C, H, W = 2, 4, 16, 16
    x = jax.random.normal(kx, (N, C, H, W), jnp.float32)

    out = dropblock2d(x, km, drop_prob=0.1, block_size=5, training=True)
    out = jax.block_until_ready(out)
    assert out.shape == (N, C, H, W)
    assert out.dtype == x.dtype
    assert bool(jnp.all(jnp.isfinite(out)))

    # pure-JAX reference (same seed mask) for a correctness sanity check
    gamma = 0.1 / 25.0
    seed = (jax.random.uniform(km, (N, H, W)) < gamma).astype(jnp.float32)
    pooled = jax.lax.reduce_window(seed, -jnp.inf, jax.lax.max,
                                   (1, 5, 5), (1, 1, 1), "SAME")
    bm = 1.0 - pooled
    ref = x * bm[:, None, :, :] * (bm.size / jnp.maximum(bm.sum(), 1.0))
    assert bool(jnp.allclose(out, ref, rtol=1e-5, atol=1e-5))

    # dtype preservation smoke test (bf16 I/O path, no forced f32 round-trip)
    out_bf16 = dropblock2d(x.astype(jnp.bfloat16), km, drop_prob=0.1, block_size=5,
                           training=True)
    out_bf16 = jax.block_until_ready(out_bf16)
    assert out_bf16.dtype == jnp.bfloat16
    assert bool(jnp.all(jnp.isfinite(out_bf16.astype(jnp.float32))))

    # even block size exercises the trim path; eval mode is the identity
    out_even = jax.block_until_ready(
        dropblock2d(x, km, drop_prob=0.1, block_size=4, training=True))
    assert out_even.shape == (N, C, H, W)
    out_eval = dropblock2d(x, km, training=False)
    assert bool(jnp.all(out_eval == x))

    print("KERNEL_OK")
</pallas_src>

<mosaic_0001>
module attributes {stable_mosaic.version = 11 : i64} {
  func.func @kernel(%arg0: i32, %arg1: memref<1x20x20xf32, #tpu.memory_space<vmem>>, %arg2: memref<1x16x16xf32, #tpu.memory_space<vmem>>) attributes {dimension_semantics = [#tpu.dimension_semantics<parallel>], iteration_bounds = array<i64: 2>, scalar_prefetch = 0 : i64, scratch_operands = 0 : i64, tpu.core_type = #tpu.core_type<tc>, window_params = [{transform_indices = @transform_0, window_bounds = array<i64: 1, 20, 20>}, {transform_indices = @transform_1, window_bounds = array<i64: 1, 16, 16>}]} {
    %c0 = arith.constant 0 : index
    %c0_0 = arith.constant 0 : index
    %c0_1 = arith.constant 0 : index
    %0 = vector.load %arg1[%c0, %c0_0, %c0_1] : memref<1x20x20xf32, #tpu.memory_space<vmem>>, vector<1x20x20xf32>
    %1 = vector.extract_strided_slice %0 {offsets = [0, 0, 0], sizes = [1, 20, 16], strides = [1, 1, 1]} : vector<1x20x20xf32> to vector<1x20x16xf32>
    %2 = vector.extract_strided_slice %0 {offsets = [0, 0, 1], sizes = [1, 20, 16], strides = [1, 1, 1]} : vector<1x20x20xf32> to vector<1x20x16xf32>
    %3 = arith.maximumf %1, %2 : vector<1x20x16xf32>
    %4 = vector.extract_strided_slice %0 {offsets = [0, 0, 2], sizes = [1, 20, 16], strides = [1, 1, 1]} : vector<1x20x20xf32> to vector<1x20x16xf32>
    %5 = arith.maximumf %3, %4 : vector<1x20x16xf32>
    %6 = vector.extract_strided_slice %0 {offsets = [0, 0, 3], sizes = [1, 20, 16], strides = [1, 1, 1]} : vector<1x20x20xf32> to vector<1x20x16xf32>
    %7 = arith.maximumf %5, %6 : vector<1x20x16xf32>
    %8 = vector.extract_strided_slice %0 {offsets = [0, 0, 4], sizes = [1, 20, 16], strides = [1, 1, 1]} : vector<1x20x20xf32> to vector<1x20x16xf32>
    %9 = arith.maximumf %7, %8 : vector<1x20x16xf32>
    %10 = vector.extract_strided_slice %9 {offsets = [0, 0, 0], sizes = [1, 16, 16], strides = [1, 1, 1]} : vector<1x20x16xf32> to vector<1x16x16xf32>
    %11 = vector.extract_strided_slice %9 {offsets = [0, 1, 0], sizes = [1, 16, 16], strides = [1, 1, 1]} : vector<1x20x16xf32> to vector<1x16x16xf32>
    %12 = arith.maximumf %10, %11 : vector<1x16x16xf32>
    %13 = vector.extract_strided_slice %9 {offsets = [0, 2, 0], sizes = [1, 16, 16], strides = [1, 1, 1]} : vector<1x20x16xf32> to vector<1x16x16xf32>
    %14 = arith.maximumf %12, %13 : vector<1x16x16xf32>
    %15 = vector.extract_strided_slice %9 {offsets = [0, 3, 0], sizes = [1, 16, 16], strides = [1, 1, 1]} : vector<1x20x16xf32> to vector<1x16x16xf32>
    %16 = arith.maximumf %14, %15 : vector<1x16x16xf32>
    %17 = vector.extract_strided_slice %9 {offsets = [0, 4, 0], sizes = [1, 16, 16], strides = [1, 1, 1]} : vector<1x20x16xf32> to vector<1x16x16xf32>
    %18 = arith.maximumf %16, %17 : vector<1x16x16xf32>
    %cst = arith.constant 1.000000e+00 : f32
    %19 = vector.broadcast %cst : f32 to vector<1x16x16xf32>
    %20 = arith.subf %19, %18 : vector<1x16x16xf32>
    %c0_2 = arith.constant 0 : index
    %c0_3 = arith.constant 0 : index
    %c0_4 = arith.constant 0 : index
    %21 = vector.load %arg2[%c0_2, %c0_3, %c0_4] : memref<1x16x16xf32, #tpu.memory_space<vmem>>, vector<1x16x16xf32>
    tpu.vector_store %arg2[%c0_2, %c0_3, %c0_4], %20 {strides = array<i32>} : memref<1x16x16xf32, #tpu.memory_space<vmem>>, vector<1x16x16xf32>,
    return
  }
  func.func @transform_0(%arg0: i32) -> (i32, i32, i32) {
    %c0_i32 = arith.constant 0 : i32
    %c0_i32_0 = arith.constant 0 : i32
    %c0_i32_1 = arith.constant 0 : i32
    return %arg0, %c0_i32, %c0_i32_0 : i32, i32, i32
  }
  func.func @transform_1(%arg0: i32) -> (i32, i32, i32) {
    %c0_i32 = arith.constant 0 : i32
    %c0_i32_0 = arith.constant 0 : i32
    %c0_i32_1 = arith.constant 0 : i32
    return %arg0, %c0_i32, %c0_i32_0 : i32, i32, i32
  }
}

</mosaic_0001>

<bundles_post_ra>
// kernel: tpu_custom_call.1
= control target key start
LH: loop header
LB: loop body
LE: loop exit
PB: predicated region body
PF: predicated region fallthrough
CT: control target
= control target key end

     0   :  { %6 = vsyncpa [#allocation3], 0  ;;  %s539_s0 = inlined_call_operand.vmem [shape: f32[2,20,20], index: 0, kind: input, shape index: {}]   ;;  %s540_s1 = inlined_call_operand.hbm [shape: f32[2,16,16], index: 1, kind: output, shape index: {}]  }
   0x1   :  { %8 = vsyncpa [#allocation3 + $0x1], 0  ;;  %s432_s6 = smov 0   ;;  %s434_s7 = smov 0  }
   0x2   :  { %s436_s8 = smov 0   ;;  %s438_s9 = smov 0  }
   0x3 LB: > { %s453_s10 = sadd.s32 4294967295, %s413_s9   ;;  %s293_s11 = sadd.s32 4294967294, %s413_s9   ;;  %s413_s9 = sphi %s438_s9, %s546_s9   ;;  %s409_s8 = sphi %s436_s8, %s545_s8   ;;  %s405_s7 = sphi %s434_s7, %s544_s7   ;;  %s401_s6 = sphi %s432_s6, %s543_s6  }
   0x4   : > { %s457_s12 = sadd.s32 1, %s413_s9   ;;  %s47_s13 = sadd.s32 1, %s409_s8 }
   0x5   : > { %s44_s14 = ssub.s32 %s413_s9, %s457_s12  ;;  %p57_p0 = scmp.ne.s32.totalorder %s409_s8, %s405_s7 }
   0x6   : > { %p45_p1 = scmp.eq.s32.totalorder %s44_s14, 0  ;;  %p58_p2 = scmp.eq.s32.totalorder %s453_s10, 1 }
   0x7   : > { %p63_p3 = scmp.ne.s32.totalorder %s405_s7, %s401_s6  ;;  %p64_p4 = scmp.eq.s32.totalorder %s293_s11, 1 }
   0x8   : > { %s468_s15 = scalar_select %p45_p1, %s409_s8, %s47_s13  }
   0x9   : > { %p470_p5 = por %p58_p2, %p57_p0  ;;  %p474_p6 = por %p64_p4, %p63_p3 }
   0xa   : > { %p296_p7 = scmp.ge.s32.totalorder %s413_s9, 1  ;;  %p90_p8 = scmp.lt.s32.totalorder %s413_s9, 3 }
   0xc   : > { %p91_p9 = pnand %p296_p7, %p90_p8 }
   0xd   : > { %p110_p10 = scmp.lt.s32.totalorder (!%p91_p9), %s453_s10, 1  ;;  %s415_s23 = smov (!%p91_p9), 127   ;;  %vm172_vm0 = vcmask (!%p91_p9), 1046528   ;;  %vm182_vm1 = vcmask (!%p91_p9), 1045504   ;;  %vm192_vm2 = vcmask (!%p91_p9), 1044480   ;;  %vm202_vm3 = vcmask (!%p91_p9), 1043456  }
   0xe   : > { %94 = sbr.rel (%p91_p9) target bundleno = 192 (0xc0), region = 24  ;;  %s416_s24 = smov (!%p91_p9), 126   ;;  %vm214_vm4 = vcmask (!%p91_p9), 130048  }
   0xf   : > { %s417_s25 = smov (!%p91_p9), 125   ;;  %s418_s26 = smov (!%p91_p9), 124  }
  0x10   : > { %s107_s27 = sand.u32 (!%p91_p9), 1, %s405_s7   ;;  %s304_s29 = sshll.u32 (!%p91_p9), %s453_s10, 8 }
  0x11   : > { %s297_s28 = sshll.u32 (!%p91_p9), %s107_s27, 4  ;;  %s492_s5 = scalar_lea.hbm (!%p91_p9), %s540_s1, %s304_s29 }
  0x12   : > { %s109_s30 = scalar_lea.vmem (!%p91_p9), [#allocation2], %s297_s28  ;;  %s419_s13 = smov (!%p91_p9), [#allocation2]  }
  0x13   : > { %s231_s2 = sshll.u32 (!%p91_p9), %s109_s30, 4  ;;  %s355_s14 = sshll.u32 (!%p91_p9), %s419_s13, 4  ;;  %s494_s2 = int_to_ptr.vmem [resolvable:$true] %s231_s2  ;;  %s356_s14 = int_to_ptr.vmem [resolvable:$false] %s355_s14 }
  0x14   : > { %s351_s11 = scalar_lea.vmem (!%p91_p9), %s494_s2, 256  ;;  %p358_p0 = scmp.lt.s32.totalorder (!%p91_p9), %s494_s2, %s356_s14 }
  0x15   : > { %s111_s18 = scalar_select %p110_p10, %s453_s10, 1 }
  0x16   : > { %s498_s10 = scalar_lea.sflag [#allocation3], %s107_s27  ;;  %p352_p11 = scmp.ne.s32.totalorder %s494_s2, %s351_s11 }
  0x17   : > { %s305_s19 = smul.u32 24, %s111_s18  ;;  %s357_s18 = scalar_lea.vmem %s356_s14, 512 }
  0x18   : > { %p353_p12 = pnand %p352_p11, %p470_p5  ;;  %p359_p1 = scmp.lt.s32.totalorder %s357_s18, %s351_s11 }
  0x19   : > { %s114_s22 = scalar_lea.vmem %s539_s0, %s305_s19 }
  0x1a   : > { %v117_v0 = vld [vmem:[%s114_s22 + $0x10] sm:$0xf]  ;;  %v115_v1 = vld [vmem:[%s114_s22] sm:$0xff]  ;;  %v116_v2 = vld [vmem:[%s114_s22 + $0x8] sm:$0xff]  ;;  %p354_p13 = pneg %p353_p12  ;;  %p360_p2 = por %p359_p1, %p358_p0 }
  0x1b   : > { %125 = vrot.lane.b32.xlu1 %v117_v0, %s415_s23  ;;  %121 = vrot.lane.b32.xlu0 %v115_v1, %s415_s23 }
  0x1c   : > { %p361_p3 = pnand %p360_p2, %p354_p13 }
  0x1f   : > { %133 = vrot.lane.b32.xlu1 %v115_v1, %s416_s24  ;;  %123 = vrot.lane.b32.xlu0 %v116_v2, %s415_s23 }
  0x23   : > { %137 = vrot.lane.b32.xlu1 %v117_v0, %s416_s24  ;;  %135 = vrot.lane.b32.xlu0 %v116_v2, %s416_s24 }
  0x27   : > { %147 = vrot.lane.b32.xlu1 %v116_v2, %s417_s25  ;;  %145 = vrot.lane.b32.xlu0 %v115_v1, %s417_s25 }
  0x2b   : > { %157 = vrot.lane.b32.xlu1 %v115_v1, %s418_s26  ;;  %149 = vrot.lane.b32.xlu0 %v117_v0, %s417_s25 }
  0x2f   : > { %161 = vrot.lane.b32.xlu1 %v117_v0, %s418_s26  ;;  %159 = vrot.lane.b32.xlu0 %v116_v2, %s418_s26 }
  0x8d   : > { %v126_v3 = vpop.permute.xlu1 %125  ;;  %v122_v4 = vpop.permute.xlu0 %121 }
  0x8e   : > { %v130_v11 = vmax.f32 %v115_v1, %v122_v4  ;;  %v132_v12 = vmax.f32 %v117_v0, %v126_v3 }
  0x91   : > { %v134_v5 = vpop.permute.xlu1 %133  ;;  %v124_v6 = vpop.permute.xlu0 %123 }
  0x92   : > { %v131_v13 = vmax.f32 %v116_v2, %v124_v6  ;;  %v142_v14 = vmax.f32 %v130_v11, %v134_v5 }
  0x95   : > { %v138_v7 = vpop.permute.xlu1 %137  ;;  %v136_v8 = vpop.permute.xlu0 %135 }
  0x96   : > { %v144_v17 = vmax.f32 %v132_v12, %v138_v7  ;;  %v143_v18 = vmax.f32 %v131_v13, %v136_v8 }
  0x99   : > { %v148_v9 = vpop.permute.xlu1 %147  ;;  %v146_v10 = vpop.permute.xlu0 %145 }
  0x9a   : > { %v154_v19 = vmax.f32 %v142_v14, %v146_v10  ;;  %v155_v20 = vmax.f32 %v143_v18, %v148_v9 }
  0x9d   : > { %v158_v15 = vpop.permute.xlu1 %157  ;;  %v150_v16 = vpop.permute.xlu0 %149 }
  0x9e   : > { %v156_v21 = vmax.f32 %v144_v17, %v150_v16  ;;  %v166_v22 = vmax.f32 %v154_v19, %v158_v15 }
  0xa0   : > { %v173_v28 = vrot.slane %v166_v22, 1  ;;  %v183_v32 = vrot.slane %v166_v22, 2  ;;  %v193_v37 = vrot.slane %v166_v22, 3  ;;  %v203_v46 = vrot.slane %v166_v22, 4 }
  0xa1   : > { %v162_v23 = vpop.permute.xlu1 %161  ;;  %v160_v24 = vpop.permute.xlu0 %159 }
  0xa2   : > { %v168_v25 = vmax.f32 %v156_v21, %v162_v23  ;;  %v167_v26 = vmax.f32 %v155_v20, %v160_v24 }
  0xa4   : > { %v176_v27 = vrot.slane %v168_v25, 1  ;;  %v186_v29 = vrot.slane %v168_v25, 2  ;;  %v174_v30 = vrot.slane %v167_v26, 1  ;;  %v184_v31 = vrot.slane %v167_v26, 2 }
  0xa5   : > { %v196_v33 = vrot.slane %v168_v25, 3  ;;  %v194_v36 = vrot.slane %v167_v26, 3  ;;  %v206_v40 = vrot.slane %v168_v25, 4  ;;  %v204_v43 = vrot.slane %v167_v26, 4 }
  0xa6   : > { %v175_v34 = vsel %vm172_vm0, %v173_v28, %v174_v30  ;;  %v177_v35 = vsel %vm172_vm0, %v174_v30, %v176_v27  ;;  %v185_v41 = vsel %vm182_vm1, %v183_v32, %v184_v31  ;;  %v187_v42 = vsel %vm182_vm1, %v184_v31, %v186_v29 }
  0xa7   : > { %v180_v38 = vmax.f32 %v166_v22, %v175_v34  ;;  %v181_v39 = vmax.f32 %v167_v26, %v177_v35  ;;  %v195_v47 = vsel %vm192_vm2, %v193_v37, %v194_v36  ;;  %v197_v48 = vsel %vm192_vm2, %v194_v36, %v196_v33 }
  0xa8   : > { %v205_v51 = vsel %vm202_vm3, %v203_v46, %v204_v43  ;;  %v207_v52 = vsel %vm202_vm3, %v204_v43, %v206_v40 }
  0xa9   : > { %v190_v44 = vmax.f32 %v180_v38, %v185_v41  ;;  %v191_v45 = vmax.f32 %v181_v39, %v187_v42 }
  0xab   : > { %v200_v49 = vmax.f32 %v190_v44, %v195_v47  ;;  %v201_v50 = vmax.f32 %v191_v45, %v197_v48 }
  0xad   : > { %v210_v53 = vmax.f32 %v200_v49, %v205_v51  ;;  %v211_v54 = vmax.f32 %v201_v50, %v207_v52 }
  0xaf   : > { %v212_v55 = vsub.f32 1.0, %v210_v53  ;;  %v213_v56 = vsub.f32 1.0, %v211_v54 }
  0xb1   : > { %215 = vst.msk [vmem:[%s109_s30] sm:$0xff] %vm214_vm4, %v212_v55  ;;  %216 = vst.msk [vmem:[%s109_s30 + $0x8] sm:$0xff] %vm214_vm4, %v213_v56 }
  0xb2   : > { %364 = shalt.err (!%p361_p3)
}
  0xb3   : > { %s365_s19 = scalar_lea.hbm %s492_s5, 256  ;;  %s369_s22 = scalar_lea.hbm %s540_s1, 512 }
  0xb4   : > { %p366_p4 = scmp.ne.s32.totalorder %s492_s5, %s365_s19  ;;  %p370_p9 = scmp.lt.u32.totalorder %s492_s5, %s540_s1 }
  0xb5   : > { %p371_p10 = scmp.lt.u32.totalorder %s369_s22, %s365_s19  ;;  %p373_p12 = scmp.lt.u32.totalorder %s365_s19, %s492_s5 }
  0xb6   : > { %p367_p7 = pnand %p366_p4, %p470_p5 }
  0xb7   : > { %p372_p11 = por %p371_p10, %p370_p9 }
  0xb8   : > { %p368_p8 = pneg %p367_p7 }
  0xb9   : > { %p374_p13 = por %p373_p12, %p372_p11 }
  0xbb   : > { %p375_p0 = pnand %p374_p13, %p368_p8 }
  0xbd   : > { %378 = shalt.err (!%p375_p0)
}
  0xbe   : > { %s420_s25 = smov 128   ;;  %s421_s26 = smov 8  }
  0xbf   : > { %306 = dma.vmem_to_hbm [thread:$0]  (%p470_p5), %s494_s2, 256, %s492_s5, %s498_s10, %s420_s25, %s420_s25, %s421_s26  }
  0xc0 PF: > { %p312_p1 = scmp.ge.s32.totalorder %s413_s9, 2  ;;  %s246_s27 = sand.u32 1, %s401_s6  }
  0xc1   : > { %s247_s28 = scalar_lea.sflag [#allocation3], %s246_s27 }
  0xc2   : > { %p309_p2 = pnand %p312_p1, %p474_p6 }
  0xc4   : > { %396 = dma.done.wait (!%p309_p2), %s247_s28, 256  }
  0xc5   : > { %398 = vsyncadd (!%p309_p2), %s247_s28, 4294967040  ;;  %p11_p3 = scmp.ge.s32.totalorder %s457_s12, 4   ;;  %s543_s6 = smov %s405_s7 }
  0xc6   : > { %s544_s7 = smov %s409_s8  ;;  %s545_s8 = smov %s468_s15 }
  0xc7   : > { %s546_s9 = smov %s457_s12  ;;  %13 = sbr.rel (!%p11_p3) target bundleno = 3 (0x3), region = 59 }
  0xce   :  { %252 = vsyncpa [#allocation3], 1 }
  0xcf   :  { %254 = vsyncpa [#allocation3 + $0x1], 1 }

</bundles_post_ra>
